<compile_context>
chip_gen: v6e
topology: v6e:2x2x1
jax: 0.10.0
libtpu: 0.0.40
codegen_flags: <defaults>
</compile_context>

<pallas_src>
import functools

import jax
import jax.numpy as jnp
from jax import lax
from jax.experimental import pallas as pl
from jax.experimental.pallas import tpu as pltpu

_LANES = 128
_SUB = 8                 # sublanes per inner step (one f32 vreg)
_UNROLL = 4              # sub-tiles per fori_loop iteration
_STEP = _SUB * _UNROLL   # rows consumed per fori_loop iteration


def _cdiv(a, b):
    return -(-a // b)


def _round_up(x, m):
    return _cdiv(x, m) * m


def _depth_mse_kernel(p_ref, t_ref, m_ref, loss_ref, msum_ref, *,
                      rows, tr, cps, needs_mask):
    # p_ref / t_ref / m_ref: (1, tr, 128) chunk of one image (native dtype).
    # loss_ref / msum_ref : (1, 1, 8, 128) resident accumulators for (b, s).
    s = pl.program_id(0)   # core-split index (v7x: one per TensorCore)
    c = pl.program_id(2)   # chunk index within this split ("arbitrary" axis)

    @pl.when(c == 0)
    def _init():
        loss_ref[...] = jnp.zeros_like(loss_ref)
        msum_ref[...] = jnp.zeros_like(msum_ref)

    # Nominal first row of this chunk; rows at/after `rows` are OOB garbage
    # (ragged last block or the clamped overhang chunk) and must be masked.
    chunk_base = (s * cps + c) * tr
    sub_iota = lax.broadcasted_iota(jnp.int32, (_SUB, _LANES), 0)

    def body(i, carry):
        la, ma = carry
        for u in range(_UNROLL):
            row0 = pl.multiple_of(i * _STEP + u * _SUB, _SUB)
            p = p_ref[0, pl.ds(row0, _SUB), :].astype(jnp.float32)
            t = t_ref[0, pl.ds(row0, _SUB), :].astype(jnp.float32)
            m = m_ref[0, pl.ds(row0, _SUB), :].astype(jnp.float32)
            r = p - t
            sq = m * (r * r)
            if needs_mask:
                valid = sub_iota < (rows - chunk_base - row0)
                sq = jnp.where(valid, sq, 0.0)
                m = jnp.where(valid, m, 0.0)
            la = la + sq
            ma = ma + m
        return la, ma

    zeros = jnp.zeros((_SUB, _LANES), jnp.float32)
    la, ma = lax.fori_loop(0, tr // _STEP, body, (zeros, zeros))

    loss_ref[0, 0] += la
    msum_ref[0, 0] += ma


def depth_mse_loss(prediction, target, mask, reduction='batch-based', *,
                   chunk_rows=2048):
    """DepthMSELoss.forward equivalent (Pallas TPU).

    prediction / target / mask: (B, H, W).  The mask may be any dtype (int8 /
    bool / bf16 preferred for bandwidth); it is cast in-register in the kernel.
    """
    assert prediction.shape == target.shape == mask.shape and prediction.ndim == 3
    B, H, W = prediction.shape
    N = H * W
    rows = _cdiv(N, _LANES)

    # Cap the chunk so 3 inputs x 2 pipeline buffers stay <= ~12 MiB
    # (v5e scoped-VMEM default is 16 MiB; v6e/v7x default 32 MiB).
    itemsize = max(jnp.dtype(x.dtype).itemsize for x in (prediction, target, mask))
    max_rows = max(_STEP, ((12 * 2 ** 20) // (6 * _LANES * itemsize)) // _STEP * _STEP)
    chunk_rows = max(_STEP, min(chunk_rows, max_rows))

    # Balanced chunking: ~chunk_rows rows per chunk, rounded to the inner-loop
    # step; the last chunk's overhang is masked in-kernel (no big wrapper pad).
    n_target = _cdiv(rows, chunk_rows)
    tr = _round_up(_cdiv(rows, n_target), _STEP)
    num_chunks = _cdiv(rows, tr)

    # v7x: keep both TensorCores busy even for B == 1 by splitting the chunk
    # range across a leading "parallel" axis of size 2.
    n_split = 2 if num_chunks >= 2 else 1
    cps = _cdiv(num_chunks, n_split)
    needs_mask = (n_split * cps * tr) != rows

    # Only sub-chunk-sized inputs are padded up to one chunk (< 32 extra rows);
    # large inputs are never copied.
    rows_arr = max(rows, tr)

    def prep(x):
        x = x.reshape(B, N)
        if rows_arr * _LANES != N:
            # Lane/row alignment pad; mask padding is 0 so it contributes
            # nothing. Only triggers for non-128-aligned or tiny inputs.
            x = jnp.pad(x, ((0, 0), (0, rows_arr * _LANES - N)))
        return x.reshape(B, rows_arr, _LANES)

    p3, t3, m3 = prep(prediction), prep(target), prep(mask)   # native dtypes

    kernel = functools.partial(_depth_mse_kernel, rows=rows, tr=tr, cps=cps,
                               needs_mask=needs_mask)

    last_chunk = num_chunks - 1
    chunk_spec = pl.BlockSpec(
        (1, tr, _LANES),
        # Clamp the second split group's overhang chunk to a valid block; its
        # contribution is fully masked in-kernel via the row bound.
        lambda s, b, c: (b, jnp.minimum(s * cps + c, last_chunk), 0))
    part_spec = pl.BlockSpec((1, 1, _SUB, _LANES), lambda s, b, c: (b, s, 0, 0))

    in_bytes = sum(int(x.size) * x.dtype.itemsize for x in (p3, t3, m3))
    out_bytes = 2 * B * n_split * _SUB * _LANES * 4
    cost = pl.CostEstimate(flops=5 * B * N, transcendentals=0,
                           bytes_accessed=in_bytes + out_bytes)

    loss_part, m_part = pl.pallas_call(
        kernel,
        out_shape=(jax.ShapeDtypeStruct((B, n_split, _SUB, _LANES), jnp.float32),
                   jax.ShapeDtypeStruct((B, n_split, _SUB, _LANES), jnp.float32)),
        grid_spec=pltpu.PrefetchScalarGridSpec(
            num_scalar_prefetch=0,
            grid=(n_split, B, cps),
            in_specs=[chunk_spec, chunk_spec, chunk_spec],
            out_specs=[part_spec, part_spec]),
        compiler_params=pltpu.CompilerParams(
            dimension_semantics=("parallel", "parallel", "arbitrary")),
        cost_estimate=cost,
    )(p3, t3, m3)

    # Tiny O(B) finalization in plain JAX.
    image_loss = jnp.sum(loss_part, axis=(1, 2, 3))          # (B,)
    two_m = 2.0 * jnp.sum(m_part, axis=(1, 2, 3))            # (B,)

    if reduction == 'batch-based':
        divisor = jnp.sum(two_m)
        return jnp.where(divisor == 0.0, jnp.float32(0.0),
                         jnp.sum(image_loss) / divisor)
    else:  # image-based
        valid = two_m != 0.0
        safe = jnp.where(valid, two_m, jnp.float32(1.0))
        return jnp.mean(jnp.where(valid, image_loss / safe, image_loss))


def _reference(prediction, target, mask, reduction='batch-based'):
    """Pure-JAX reference mirroring the PyTorch module."""
    p = prediction.astype(jnp.float32)
    t = target.astype(jnp.float32)
    m = mask.astype(jnp.float32)
    M = jnp.sum(m, (1, 2))
    res = p - t
    image_loss = jnp.sum(m * res * res, (1, 2))
    two_m = 2.0 * M
    if reduction == 'batch-based':
        divisor = jnp.sum(two_m)
        return jnp.where(divisor == 0.0, 0.0, jnp.sum(image_loss) / divisor)
    valid = two_m != 0.0
    safe = jnp.where(valid, two_m, 1.0)
    return jnp.mean(jnp.where(valid, image_loss / safe, image_loss))


if __name__ == "__main__":
    key = jax.random.PRNGKey(0)
    k1, k2, k3, k4, k5, k6 = jax.random.split(key, 6)

    # Case 1: module-typical small shapes (B=2, 16x16), both reductions.
    B, H, W = 2, 16, 16
    prediction = jax.random.normal(k1, (B, H, W), dtype=jnp.float32)
    target = jax.random.normal(k2, (B, H, W), dtype=jnp.float32)
    mask = (jax.random.uniform(k3, (B, H, W)) > 0.25).astype(jnp.float32)

    loss = jax.block_until_ready(depth_mse_loss(prediction, target, mask))
    ref = _reference(prediction, target, mask)
    assert jnp.allclose(loss, ref, rtol=1e-4, atol=1e-6), (loss, ref)

    loss_i = jax.block_until_ready(
        depth_mse_loss(prediction, target, mask, reduction='image-based'))
    ref_i = _reference(prediction, target, mask, reduction='image-based')
    assert jnp.allclose(loss_i, ref_i, rtol=1e-4, atol=1e-6), (loss_i, ref_i)

    # All-zero mask -> divisor == 0 -> loss == 0 (guard path).
    loss_z = jax.block_until_ready(
        depth_mse_loss(prediction, target, jnp.zeros_like(mask)))
    assert float(loss_z) == 0.0, loss_z

    # Case 2: B=1, non-lane-aligned spatial size, small chunk_rows to force
    # multiple chunks with an odd chunk count -> exercises ragged-tail masking,
    # the clamped overhang chunk of the core split, and cross-chunk accumulation.
    pred2 = jax.random.normal(k4, (1, 100, 100), dtype=jnp.float32)
    tgt2 = jax.random.normal(k5, (1, 100, 100), dtype=jnp.float32)
    msk2 = (jax.random.uniform(k6, (1, 100, 100)) > 0.5).astype(jnp.float32)

    loss2 = jax.block_until_ready(depth_mse_loss(pred2, tgt2, msk2, chunk_rows=32))
    ref2 = _reference(pred2, tgt2, msk2)
    assert jnp.allclose(loss2, ref2, rtol=1e-4, atol=1e-6), (loss2, ref2)

    print("KERNEL_OK")
</pallas_src>

<mosaic_0001>
module attributes {stable_mosaic.version = 11 : i64} {
  func.func @_depth_mse_kernel(%arg0: i32, %arg1: i32, %arg2: i32, %arg3: memref<1x32x128xf32, #tpu.memory_space<vmem>>, %arg4: memref<1x32x128xf32, #tpu.memory_space<vmem>>, %arg5: memref<1x32x128xf32, #tpu.memory_space<vmem>>, %arg6: memref<1x1x8x128xf32, #tpu.memory_space<vmem>>, %arg7: memref<1x1x8x128xf32, #tpu.memory_space<vmem>>) attributes {dimension_semantics = [#tpu.dimension_semantics<parallel>, #tpu.dimension_semantics<parallel>, #tpu.dimension_semantics<arbitrary>], iteration_bounds = array<i64: 1, 2, 1>, scalar_prefetch = 0 : i64, scratch_operands = 0 : i64, tpu.core_type = #tpu.core_type<tc>, window_params = [{transform_indices = @transform_0, window_bounds = array<i64: 1, 32, 128>}, {transform_indices = @transform_1, window_bounds = array<i64: 1, 32, 128>}, {transform_indices = @transform_2, window_bounds = array<i64: 1, 32, 128>}, {transform_indices = @transform_3, window_bounds = array<i64: 1, 1, 8, 128>}, {transform_indices = @transform_4, window_bounds = array<i64: 1, 1, 8, 128>}]} {
    %c0_i32 = arith.constant 0 : i32
    %0 = arith.cmpi eq, %arg2, %c0_i32 : i32
    %1 = arith.extui %0 : i1 to i32
    %c0_i32_0 = arith.constant 0 : i32
    %2 = arith.cmpi ne, %1, %c0_i32_0 : i32
    scf.if %2 {
      %cst_58 = arith.constant 0.000000e+00 : f32
      %120 = vector.broadcast %cst_58 : f32 to vector<1x1x8x128xf32>
      %c0_59 = arith.constant 0 : index
      %c0_60 = arith.constant 0 : index
      %c0_61 = arith.constant 0 : index
      %c0_62 = arith.constant 0 : index
      %121 = vector.load %arg6[%c0_59, %c0_60, %c0_61, %c0_62] : memref<1x1x8x128xf32, #tpu.memory_space<vmem>>, vector<1x1x8x128xf32>
      tpu.vector_store %arg6[%c0_59, %c0_60, %c0_61, %c0_62], %120 {strides = array<i32>} : memref<1x1x8x128xf32, #tpu.memory_space<vmem>>, vector<1x1x8x128xf32>,
      %cst_63 = arith.constant 0.000000e+00 : f32
      %122 = vector.broadcast %cst_63 : f32 to vector<1x1x8x128xf32>
      %c0_64 = arith.constant 0 : index
      %c0_65 = arith.constant 0 : index
      %c0_66 = arith.constant 0 : index
      %c0_67 = arith.constant 0 : index
      %123 = vector.load %arg7[%c0_64, %c0_65, %c0_66, %c0_67] : memref<1x1x8x128xf32, #tpu.memory_space<vmem>>, vector<1x1x8x128xf32>
      tpu.vector_store %arg7[%c0_64, %c0_65, %c0_66, %c0_67], %122 {strides = array<i32>} : memref<1x1x8x128xf32, #tpu.memory_space<vmem>>, vector<1x1x8x128xf32>,
    } else {
    }
    %c1_i32 = arith.constant 1 : i32
    %3 = arith.muli %arg0, %c1_i32 : i32
    %4 = arith.addi %3, %arg2 : i32
    %c32_i32 = arith.constant 32 : i32
    %5 = arith.muli %4, %c32_i32 : i32
    %6 = tpu.iota {dimensions = array<i32: 0>} : vector<8x128xi32>
    %cst = arith.constant 0.000000e+00 : f32
    %7 = vector.broadcast %cst : f32 to vector<8x128xf32>
    %c0_i32_1 = arith.constant 0 : i32
    %c32_i32_2 = arith.constant 32 : i32
    %8 = arith.muli %c0_i32_1, %c32_i32_2 : i32
    %c0_i32_3 = arith.constant 0 : i32
    %9 = arith.addi %8, %c0_i32_3 : i32
    %10 = tpu.assume_multiple %9, 8 : i32
    %c0 = arith.constant 0 : index
    %11 = arith.index_cast %10 : i32 to index
    %c0_4 = arith.constant 0 : index
    %12 = vector.load %arg3[%c0, %11, %c0_4] : memref<1x32x128xf32, #tpu.memory_space<vmem>>, vector<1x8x128xf32>
    %13 = vector.shape_cast %12 : vector<1x8x128xf32> to vector<8x128xf32>
    %c0_5 = arith.constant 0 : index
    %14 = arith.index_cast %10 : i32 to index
    %c0_6 = arith.constant 0 : index
    %15 = vector.load %arg4[%c0_5, %14, %c0_6] : memref<1x32x128xf32, #tpu.memory_space<vmem>>, vector<1x8x128xf32>
    %16 = vector.shape_cast %15 : vector<1x8x128xf32> to vector<8x128xf32>
    %c0_7 = arith.constant 0 : index
    %17 = arith.index_cast %10 : i32 to index
    %c0_8 = arith.constant 0 : index
    %18 = vector.load %arg5[%c0_7, %17, %c0_8] : memref<1x32x128xf32, #tpu.memory_space<vmem>>, vector<1x8x128xf32>
    %19 = vector.shape_cast %18 : vector<1x8x128xf32> to vector<8x128xf32>
    %20 = arith.subf %13, %16 : vector<8x128xf32>
    %21 = arith.mulf %20, %20 : vector<8x128xf32>
    %22 = arith.mulf %19, %21 : vector<8x128xf32>
    %c2_i32 = arith.constant 2 : i32
    %23 = arith.subi %c2_i32, %5 : i32
    %24 = arith.subi %23, %10 : i32
    %25 = vector.broadcast %24 : i32 to vector<8x128xi32>
    %26 = arith.cmpi slt, %6, %25 : vector<8x128xi32>
    %cst_9 = arith.constant 0.000000e+00 : f32
    %27 = vector.broadcast %cst_9 : f32 to vector<8x128xf32>
    %28 = arith.select %26, %22, %27 : vector<8x128xi1>, vector<8x128xf32>
    %cst_10 = arith.constant 0.000000e+00 : f32
    %29 = vector.broadcast %cst_10 : f32 to vector<8x128xf32>
    %30 = arith.select %26, %19, %29 : vector<8x128xi1>, vector<8x128xf32>
    %31 = arith.addf %7, %28 : vector<8x128xf32>
    %32 = arith.addf %7, %30 : vector<8x128xf32>
    %c32_i32_11 = arith.constant 32 : i32
    %33 = arith.muli %c0_i32_1, %c32_i32_11 : i32
    %c8_i32 = arith.constant 8 : i32
    %34 = arith.addi %33, %c8_i32 : i32
    %35 = tpu.assume_multiple %34, 8 : i32
    %c0_12 = arith.constant 0 : index
    %36 = arith.index_cast %35 : i32 to index
    %c0_13 = arith.constant 0 : index
    %37 = vector.load %arg3[%c0_12, %36, %c0_13] : memref<1x32x128xf32, #tpu.memory_space<vmem>>, vector<1x8x128xf32>
    %38 = vector.shape_cast %37 : vector<1x8x128xf32> to vector<8x128xf32>
    %c0_14 = arith.constant 0 : index
    %39 = arith.index_cast %35 : i32 to index
    %c0_15 = arith.constant 0 : index
    %40 = vector.load %arg4[%c0_14, %39, %c0_15] : memref<1x32x128xf32, #tpu.memory_space<vmem>>, vector<1x8x128xf32>
    %41 = vector.shape_cast %40 : vector<1x8x128xf32> to vector<8x128xf32>
    %c0_16 = arith.constant 0 : index
    %42 = arith.index_cast %35 : i32 to index
    %c0_17 = arith.constant 0 : index
    %43 = vector.load %arg5[%c0_16, %42, %c0_17] : memref<1x32x128xf32, #tpu.memory_space<vmem>>, vector<1x8x128xf32>
    %44 = vector.shape_cast %43 : vector<1x8x128xf32> to vector<8x128xf32>
    %45 = arith.subf %38, %41 : vector<8x128xf32>
    %46 = arith.mulf %45, %45 : vector<8x128xf32>
    %47 = arith.mulf %44, %46 : vector<8x128xf32>
    %c2_i32_18 = arith.constant 2 : i32
    %48 = arith.subi %c2_i32_18, %5 : i32
    %49 = arith.subi %48, %35 : i32
    %50 = vector.broadcast %49 : i32 to vector<8x128xi32>
    %51 = arith.cmpi slt, %6, %50 : vector<8x128xi32>
    %cst_19 = arith.constant 0.000000e+00 : f32
    %52 = vector.broadcast %cst_19 : f32 to vector<8x128xf32>
    %53 = arith.select %51, %47, %52 : vector<8x128xi1>, vector<8x128xf32>
    %cst_20 = arith.constant 0.000000e+00 : f32
    %54 = vector.broadcast %cst_20 : f32 to vector<8x128xf32>
    %55 = arith.select %51, %44, %54 : vector<8x128xi1>, vector<8x128xf32>
    %56 = arith.addf %31, %53 : vector<8x128xf32>
    %57 = arith.addf %32, %55 : vector<8x128xf32>
    %c32_i32_21 = arith.constant 32 : i32
    %58 = arith.muli %c0_i32_1, %c32_i32_21 : i32
    %c16_i32 = arith.constant 16 : i32
    %59 = arith.addi %58, %c16_i32 : i32
    %60 = tpu.assume_multiple %59, 8 : i32
    %c0_22 = arith.constant 0 : index
    %61 = arith.index_cast %60 : i32 to index
    %c0_23 = arith.constant 0 : index
    %62 = vector.load %arg3[%c0_22, %61, %c0_23] : memref<1x32x128xf32, #tpu.memory_space<vmem>>, vector<1x8x128xf32>
    %63 = vector.shape_cast %62 : vector<1x8x128xf32> to vector<8x128xf32>
    %c0_24 = arith.constant 0 : index
    %64 = arith.index_cast %60 : i32 to index
    %c0_25 = arith.constant 0 : index
    %65 = vector.load %arg4[%c0_24, %64, %c0_25] : memref<1x32x128xf32, #tpu.memory_space<vmem>>, vector<1x8x128xf32>
    %66 = vector.shape_cast %65 : vector<1x8x128xf32> to vector<8x128xf32>
    %c0_26 = arith.constant 0 : index
    %67 = arith.index_cast %60 : i32 to index
    %c0_27 = arith.constant 0 : index
    %68 = vector.load %arg5[%c0_26, %67, %c0_27] : memref<1x32x128xf32, #tpu.memory_space<vmem>>, vector<1x8x128xf32>
    %69 = vector.shape_cast %68 : vector<1x8x128xf32> to vector<8x128xf32>
    %70 = arith.subf %63, %66 : vector<8x128xf32>
    %71 = arith.mulf %70, %70 : vector<8x128xf32>
    %72 = arith.mulf %69, %71 : vector<8x128xf32>
    %c2_i32_28 = arith.constant 2 : i32
    %73 = arith.subi %c2_i32_28, %5 : i32
    %74 = arith.subi %73, %60 : i32
    %75 = vector.broadcast %74 : i32 to vector<8x128xi32>
    %76 = arith.cmpi slt, %6, %75 : vector<8x128xi32>
    %cst_29 = arith.constant 0.000000e+00 : f32
    %77 = vector.broadcast %cst_29 : f32 to vector<8x128xf32>
    %78 = arith.select %76, %72, %77 : vector<8x128xi1>, vector<8x128xf32>
    %cst_30 = arith.constant 0.000000e+00 : f32
    %79 = vector.broadcast %cst_30 : f32 to vector<8x128xf32>
    %80 = arith.select %76, %69, %79 : vector<8x128xi1>, vector<8x128xf32>
    %81 = arith.addf %56, %78 : vector<8x128xf32>
    %82 = arith.addf %57, %80 : vector<8x128xf32>
    %c32_i32_31 = arith.constant 32 : i32
    %83 = arith.muli %c0_i32_1, %c32_i32_31 : i32
    %c24_i32 = arith.constant 24 : i32
    %84 = arith.addi %83, %c24_i32 : i32
    %85 = tpu.assume_multiple %84, 8 : i32
    %c0_32 = arith.constant 0 : index
    %86 = arith.index_cast %85 : i32 to index
    %c0_33 = arith.constant 0 : index
    %87 = vector.load %arg3[%c0_32, %86, %c0_33] : memref<1x32x128xf32, #tpu.memory_space<vmem>>, vector<1x8x128xf32>
    %88 = vector.shape_cast %87 : vector<1x8x128xf32> to vector<8x128xf32>
    %c0_34 = arith.constant 0 : index
    %89 = arith.index_cast %85 : i32 to index
    %c0_35 = arith.constant 0 : index
    %90 = vector.load %arg4[%c0_34, %89, %c0_35] : memref<1x32x128xf32, #tpu.memory_space<vmem>>, vector<1x8x128xf32>
    %91 = vector.shape_cast %90 : vector<1x8x128xf32> to vector<8x128xf32>
    %c0_36 = arith.constant 0 : index
    %92 = arith.index_cast %85 : i32 to index
    %c0_37 = arith.constant 0 : index
    %93 = vector.load %arg5[%c0_36, %92, %c0_37] : memref<1x32x128xf32, #tpu.memory_space<vmem>>, vector<1x8x128xf32>
    %94 = vector.shape_cast %93 : vector<1x8x128xf32> to vector<8x128xf32>
    %95 = arith.subf %88, %91 : vector<8x128xf32>
    %96 = arith.mulf %95, %95 : vector<8x128xf32>
    %97 = arith.mulf %94, %96 : vector<8x128xf32>
    %c2_i32_38 = arith.constant 2 : i32
    %98 = arith.subi %c2_i32_38, %5 : i32
    %99 = arith.subi %98, %85 : i32
    %100 = vector.broadcast %99 : i32 to vector<8x128xi32>
    %101 = arith.cmpi slt, %6, %100 : vector<8x128xi32>
    %cst_39 = arith.constant 0.000000e+00 : f32
    %102 = vector.broadcast %cst_39 : f32 to vector<8x128xf32>
    %103 = arith.select %101, %97, %102 : vector<8x128xi1>, vector<8x128xf32>
    %cst_40 = arith.constant 0.000000e+00 : f32
    %104 = vector.broadcast %cst_40 : f32 to vector<8x128xf32>
    %105 = arith.select %101, %94, %104 : vector<8x128xi1>, vector<8x128xf32>
    %106 = arith.addf %81, %103 : vector<8x128xf32>
    %107 = arith.addf %82, %105 : vector<8x128xf32>
    %c1_i32_41 = arith.constant 1 : i32
    %c0_42 = arith.constant 0 : index
    %c0_43 = arith.constant 0 : index
    %c0_44 = arith.constant 0 : index
    %c0_45 = arith.constant 0 : index
    %108 = vector.load %arg6[%c0_42, %c0_43, %c0_44, %c0_45] : memref<1x1x8x128xf32, #tpu.memory_space<vmem>>, vector<1x1x8x128xf32>
    %109 = vector.shape_cast %108 : vector<1x1x8x128xf32> to vector<8x128xf32>
    %110 = arith.addf %109, %106 : vector<8x128xf32>
    %c0_46 = arith.constant 0 : index
    %c0_47 = arith.constant 0 : index
    %c0_48 = arith.constant 0 : index
    %c0_49 = arith.constant 0 : index
    %111 = vector.load %arg6[%c0_46, %c0_47, %c0_48, %c0_49] : memref<1x1x8x128xf32, #tpu.memory_space<vmem>>, vector<1x1x8x128xf32>
    %112 = vector.shape_cast %111 : vector<1x1x8x128xf32> to vector<8x128xf32>
    %113 = vector.shape_cast %110 : vector<8x128xf32> to vector<1x1x8x128xf32>
    tpu.vector_store %arg6[%c0_46, %c0_47, %c0_48, %c0_49], %113 {strides = array<i32>} : memref<1x1x8x128xf32, #tpu.memory_space<vmem>>, vector<1x1x8x128xf32>,
    %c0_50 = arith.constant 0 : index
    %c0_51 = arith.constant 0 : index
    %c0_52 = arith.constant 0 : index
    %c0_53 = arith.constant 0 : index
    %114 = vector.load %arg7[%c0_50, %c0_51, %c0_52, %c0_53] : memref<1x1x8x128xf32, #tpu.memory_space<vmem>>, vector<1x1x8x128xf32>
    %115 = vector.shape_cast %114 : vector<1x1x8x128xf32> to vector<8x128xf32>
    %116 = arith.addf %115, %107 : vector<8x128xf32>
    %c0_54 = arith.constant 0 : index
    %c0_55 = arith.constant 0 : index
    %c0_56 = arith.constant 0 : index
    %c0_57 = arith.constant 0 : index
    %117 = vector.load %arg7[%c0_54, %c0_55, %c0_56, %c0_57] : memref<1x1x8x128xf32, #tpu.memory_space<vmem>>, vector<1x1x8x128xf32>
    %118 = vector.shape_cast %117 : vector<1x1x8x128xf32> to vector<8x128xf32>
    %119 = vector.shape_cast %116 : vector<8x128xf32> to vector<1x1x8x128xf32>
    tpu.vector_store %arg7[%c0_54, %c0_55, %c0_56, %c0_57], %119 {strides = array<i32>} : memref<1x1x8x128xf32, #tpu.memory_space<vmem>>, vector<1x1x8x128xf32>,
    return
  }
  func.func @transform_0(%arg0: i32, %arg1: i32, %arg2: i32) -> (i32, i32, i32) {
    %c1_i32 = arith.constant 1 : i32
    %0 = arith.muli %arg0, %c1_i32 : i32
    %1 = arith.addi %0, %arg2 : i32
    %c0_i32 = arith.constant 0 : i32
    %2 = arith.minsi %1, %c0_i32 : i32
    %c0_i32_0 = arith.constant 0 : i32
    %c0_i32_1 = arith.constant 0 : i32
    return %arg1, %2, %c0_i32_0 : i32, i32, i32
  }
  func.func @transform_1(%arg0: i32, %arg1: i32, %arg2: i32) -> (i32, i32, i32) {
    %c1_i32 = arith.constant 1 : i32
    %0 = arith.muli %arg0, %c1_i32 : i32
    %1 = arith.addi %0, %arg2 : i32
    %c0_i32 = arith.constant 0 : i32
    %2 = arith.minsi %1, %c0_i32 : i32
    %c0_i32_0 = arith.constant 0 : i32
    %c0_i32_1 = arith.constant 0 : i32
    return %arg1, %2, %c0_i32_0 : i32, i32, i32
  }
  func.func @transform_2(%arg0: i32, %arg1: i32, %arg2: i32) -> (i32, i32, i32) {
    %c1_i32 = arith.constant 1 : i32
    %0 = arith.muli %arg0, %c1_i32 : i32
    %1 = arith.addi %0, %arg2 : i32
    %c0_i32 = arith.constant 0 : i32
    %2 = arith.minsi %1, %c0_i32 : i32
    %c0_i32_0 = arith.constant 0 : i32
    %c0_i32_1 = arith.constant 0 : i32
    return %arg1, %2, %c0_i32_0 : i32, i32, i32
  }
  func.func @transform_3(%arg0: i32, %arg1: i32, %arg2: i32) -> (i32, i32, i32, i32) {
    %c0_i32 = arith.constant 0 : i32
    %c0_i32_0 = arith.constant 0 : i32
    %c0_i32_1 = arith.constant 0 : i32
    return %arg1, %arg0, %c0_i32, %c0_i32_0 : i32, i32, i32, i32
  }
  func.func @transform_4(%arg0: i32, %arg1: i32, %arg2: i32) -> (i32, i32, i32, i32) {
    %c0_i32 = arith.constant 0 : i32
    %c0_i32_0 = arith.constant 0 : i32
    %c0_i32_1 = arith.constant 0 : i32
    return %arg1, %arg0, %c0_i32, %c0_i32_0 : i32, i32, i32, i32
  }
}

</mosaic_0001>

<bundles_post_ra>
// kernel: tpu_custom_call.1
= control target key start
LH: loop header
LB: loop body
LE: loop exit
PB: predicated region body
PF: predicated region fallthrough
CT: control target
= control target key end

     0   :  { %s1248_s0 = inlined_call_operand.hbm [shape: f32[2,32,128], index: 0, kind: input, shape index: {}]   ;;  %s1249_s1 = inlined_call_operand.hbm [shape: f32[2,32,128], index: 1, kind: input, shape index: {}]   ;;  %s1250_s2 = inlined_call_operand.hbm [shape: f32[2,32,128], index: 2, kind: input, shape index: {}]   ;;  %s1251_s3 = inlined_call_operand.hbm [shape: f32[2,1,8,128], index: 3, kind: output, shape index: {0}]   ;;  %s1252_s4 = inlined_call_operand.hbm [shape: f32[2,1,8,128], index: 4, kind: output, shape index: {1}]  }
   0x1   :  { %1259 = sst [smem:[#allocation19_spill]] %s1249_s1 }
   0x2   :  { %10 = vsyncpa [#allocation3], 0 }
   0x3   :  { %12 = vsyncpa [#allocation3 + $0x1], 0 }
   0x4   :  { %13 = vsyncpa [#allocation6], 0 }
   0x5   :  { %15 = vsyncpa [#allocation6 + $0x1], 0 }
   0x6   :  { %16 = vsyncpa [#allocation4], 0 }
   0x7   :  { %18 = vsyncpa [#allocation4 + $0x1], 0 }
   0x8   :  { %19 = vsyncpa [#allocation10], 0 }
   0x9   :  { %21 = vsyncpa [#allocation10 + $0x1], 0  ;;  %s1006_s15 = smov 0   ;;  %s1008_s16 = smov 0  }
   0xa   :  { %s1010_s17 = smov 0   ;;  %s1012_s18 = smov 0  }
   0xb   :  { %s1014_s19 = smov 0   ;;  %s1016_s20 = smov 0  }
   0xc LB: > { %1260 = sst [smem:[#allocation15_spill]] %s968_s19  ;;  %s1037_s21 = sadd.s32 4294967295, %s972_s20   ;;  %s972_s20 = sphi %s1016_s20, %s27_s20   ;;  %s968_s19 = sphi %s1014_s19, %s1277_s19   ;;  %s964_s18 = sphi %s1012_s18, %s1276_s18   ;;  %s960_s17 = sphi %s1010_s17, %s1280_s17   ;;  %s956_s16 = sphi %s1008_s16, %s1279_s16   ;;  %s952_s15 = sphi %s1006_s15, %s1278_s15  }
   0xd   : > { %s658_s22 = sadd.s32 4294967294, %s972_s20   ;;  %s42_s23 = sadd.s32 1, %s968_s19 }
   0xe   : > { %s61_s24 = sadd.s32 1, %s960_s17  ;;  %p44_p0 = scmp.ge.s32.totalorder %s42_s23, 2 }
   0xf   : > { %p68_p1 = scmp.ne.s32.totalorder %s960_s17, %s956_s16  ;;  %p69_p2 = scmp.eq.s32.totalorder %s972_s20, 0 }
  0x10   : > { %p74_p3 = scmp.ne.s32.totalorder %s956_s16, %s952_s15  ;;  %s1282_s23 = smov (%p44_p0, %s42_s23), 0 }
  0x11   : > { %1261 = sst [smem:[#allocation16_spill]] %s1282_s23  ;;  %p1049_p4 = por %p69_p2, %p68_p1 }
  0x12   : > { %p75_p5 = scmp.eq.s32.totalorder %s1037_s21, 0  ;;  %s56_s26 = ssub.s32 %s968_s19, %s1282_s23 }
  0x13   : > { %p168_p6 = scmp.eq.s32.totalorder %s1037_s21, 1  ;;  %p59_p7 = scmp.eq.s32.totalorder %s56_s26, 0 }
  0x14   : > { %p1057_p8 = por %p75_p5, %p74_p3  ;;  %p174_p10 = scmp.eq.s32.totalorder %s658_s22, 1 }
  0x15   : > { %p1061_p9 = por %p168_p6, %p68_p1  ;;  %p721_p13 = scmp.lt.s32.totalorder %s972_s20, 2 }
  0x16   : > { %s1066_s29 = scalar_select %p59_p7, %s960_s17, %s61_s24  }
  0x17   : > { %p1068_p11 = por %p174_p10, %p74_p3  ;;  %s1253_s5 = sand.u32 1, %s960_s17  }
  0x18   : > { %1265 = sst [smem:[#allocation17_spill]] %s1066_s29  ;;  %s1077_s6 = sshll.u32 %s1253_s5, 5 }
  0x19   : > { %s1266_s30 = scalar_select %p1068_p11, 1, 0 }
  0x1a   : > { %s1080_s7 = sshll.u32 %s968_s19, 9  ;;  %p1084_p0 = pnand %p721_p13, %p1049_p4 }
  0x1b   : > { %1267 = sst [smem:[#allocation18_spill]] %s1266_s30  ;;  %s248_s9 = sand.u32 1, %s972_s20  }
  0x1c   : > { %s1269_s1 = sld [smem:[#allocation19_spill]]  ;;  %s252_s13 = scalar_lea.vmem [#allocation5], %s1077_s6 }
  0x1d   : > { %s264_s14 = sshll.u32 %s252_s13, 4  ;;  %p670_p1 = scmp.ge.s32.totalorder %s972_s20, 1  ;;  %s265_s14 = int_to_ptr.vmem [resolvable:$true] %s264_s14 }
  0x1e   : > { %p298_p2 = scmp.lt.s32.totalorder %s972_s20, 3  ;;  %s1096_s22 = scalar_lea.sflag [#allocation6], %s248_s9 }
  0x1f   : > { %p776_p3 = pneg %p1084_p0  ;;  %s787_s24 = scalar_lea.vmem %s265_s14, 512 }
  0x20   : > { %p788_p4 = scmp.ne.s32.totalorder %s265_s14, %s787_s24  ;;  %s974_s25 = smov [#allocation5]  }
  0x21   : > { %s792_s26 = sshll.u32 %s974_s25, 4  ;;  %s793_s26 = int_to_ptr.vmem [resolvable:$false] %s792_s26 }
  0x22   : > { %s263_s12 = scalar_lea.hbm %s1269_s1, %s1080_s7  ;;  %p790_p5 = pnand %p788_p4, %p776_p3 }
  0x23   : > { %s794_s10 = scalar_lea.vmem %s793_s26, 1024  ;;  %p795_p7 = scmp.lt.s32.totalorder %s265_s14, %s793_s26 }
  0x24   : > { %p791_p6 = pneg %p790_p5  ;;  %p796_p10 = scmp.lt.s32.totalorder %s794_s10, %s787_s24 }
  0x26   : > { %p797_p13 = por %p796_p10, %p795_p7 }
  0x28   : > { %p798_p12 = pnand %p797_p13, %p791_p6 }
  0x2a   : > { %801 = shalt.err (!%p798_p12)
}
  0x2b   : > { %s1257_s11 = smov 128   ;;  %s976_s9 = smov 8  }
  0x2c   : > { %710 = dma.hbm_to_vmem [thread:$0]  (!%p1084_p0), %s263_s12, 512, %s265_s14, %s1096_s22, %s1257_s11, %s1257_s11, %s976_s9  }
  0x2d   : > { %p1113_p4 = pnand %p670_p1, %p298_p2  ;;  %s237_s26 = scalar_lea.hbm %s1248_s0, %s1080_s7 }
  0x2e   : > { %s226_s10 = scalar_lea.vmem [#allocation2], %s1077_s6  ;;  %s289_s19 = scalar_lea.hbm %s1250_s2, %s1080_s7 }
  0x2f   : > { %s238_s5 = sshll.u32 %s226_s10, 4  ;;  %s1271_s29 = sand.u32 1, %s960_s17   ;;  %s239_s5 = int_to_ptr.vmem [resolvable:$true] %s238_s5 }
  0x30   : > { %s223_s30 = scalar_lea.sflag [#allocation3], %s1271_s29  ;;  %s815_s12 = scalar_lea.vmem %s239_s5, 512 }
  0x31   : > { %p816_p12 = scmp.ne.s32.totalorder %s239_s5, %s815_s12  ;;  %s977_s14 = smov [#allocation2]  }
  0x32   : > { %s820_s11 = sshll.u32 %s977_s14, 4  ;;  %s821_s11 = int_to_ptr.vmem [resolvable:$false] %s820_s11 }
  0x33   : > { %p818_p1 = pnand %p816_p12, %p776_p3  ;;  %s822_s24 = scalar_lea.vmem %s821_s11, 1024 }
  0x34   : > { %p823_p5 = scmp.lt.s32.totalorder %s239_s5, %s821_s11  ;;  %p824_p6 = scmp.lt.s32.totalorder %s822_s24, %s815_s12 }
  0x35   : > { %p819_p2 = pneg %p818_p1 }
  0x36   : > { %p825_p7 = por %p824_p6, %p823_p5 }
  0x38   : > { %p826_p10 = pnand %p825_p7, %p819_p2 }
  0x3a   : > { %829 = shalt.err (!%p826_p10)
}
  0x3b   : > { %s1272_s1 = smov 128   ;;  %s278_s23 = scalar_lea.vmem [#allocation7], %s1077_s6 }
  0x3c   : > { %707 = dma.hbm_to_vmem [thread:$0]  (!%p1084_p0), %s237_s26, 512, %s239_s5, %s223_s30, %s1272_s1, %s1272_s1, %s976_s9  }
  0x3d   : > { %s290_s29 = sshll.u32 %s278_s23, 4  ;;  %s978_s11 = smov [#allocation7]   ;;  %s291_s29 = int_to_ptr.vmem [resolvable:$true] %s290_s29 }
  0x3e   : > { %s843_s25 = scalar_lea.vmem %s291_s29, 512  ;;  %s848_s10 = sshll.u32 %s978_s11, 4  ;;  %s849_s10 = int_to_ptr.vmem [resolvable:$false] %s848_s10 }
  0x3f   : > { %p844_p13 = scmp.ne.s32.totalorder %s291_s29, %s843_s25  ;;  %s850_s12 = scalar_lea.vmem %s849_s10, 1024 }
  0x40   : > { %p851_p2 = scmp.lt.s32.totalorder %s291_s29, %s849_s10  ;;  %p852_p5 = scmp.lt.s32.totalorder %s850_s12, %s843_s25 }
  0x41   : > { %p846_p12 = pnand %p844_p13, %p776_p3 }
  0x42   : > { %p853_p6 = por %p852_p5, %p851_p2 }
  0x43   : > { %p847_p1 = pneg %p846_p12 }
  0x45   : > { %p854_p7 = pnand %p853_p6, %p847_p1 }
  0x47   : > { %857 = shalt.err (!%p854_p7)
}
  0x48   : > { %713 = dma.hbm_to_vmem [thread:$0]  (!%p1084_p0), %s289_s19, 512, %s291_s29, %s1096_s22, %s1272_s1, %s1272_s1, %s976_s9  }
  0x49   : > { %302 = sbr.rel (%p1113_p4) target bundleno = 130 (0x82), region = 32  ;;  %s1154_s6 = sand.u32 (!%p1113_p4), 1, %s956_s16  }
  0x4a   : > { %s671_s8 = sshll.u32 (!%p1113_p4), %s1154_s6, 5  ;;  %s305_s26 = scalar_lea.sflag (!%p1113_p4), [#allocation3], %s1154_s6 }
  0x4b   : > { %s308_s14 = scalar_lea.vmem (!%p1113_p4), [#allocation2], %s671_s8 }
  0x4e   : > { %935 = dma.done.wait (%p1057_p8), %s305_s26, 512  }
  0x4f   : > { %937 = vsyncadd (%p1057_p8), %s305_s26, 4294966784  ;;  %s313_s19 = sand.u32 1, %s1037_s21   ;;  %s317_s22 = scalar_lea.vmem [#allocation5], %s671_s8 }
  0x50   : > { %s314_s7 = scalar_lea.sflag [#allocation6], %s313_s19 }
  0x51   : > { %939 = dma.done.wait (%p1057_p8), %s314_s7, 1024  }
  0x52   : > { %941 = vsyncadd (%p1057_p8), %s314_s7, 4294966272  ;;  %s674_s9 = sshll.u32 %s1154_s6, 3  ;;  %v386_v0 = vlaneseq  ;;  %s687_s13 = sshll.u32 %s964_s18, 7  ;;  %v388_v2 = vld [vmem:[%s308_s14] sm:$0xff] }
  0x53   : > { %s365_s24 = scalar_lea.vmem [#allocation9], %s674_s9  ;;  %v389_v3 = vld [vmem:[%s317_s22] sm:$0xff]  ;;  %s326_s21 = scalar_lea.vmem [#allocation7], %s671_s8 }
  0x54   : > { %v387_v1 = vshrl.u32 %v386_v0, 7  ;;  %s490_s1 = sshll.u32 %s365_s24, 4  ;;  %v390_v4 = vld [vmem:[%s326_s21] sm:$0xff]  ;;  %v391_v5 = vsub.f32 %v388_v2, %v389_v3  ;;  %s1175_s29 = scalar_lea.hbm %s1252_s4, %s687_s13  ;;  %s1177_s1 = int_to_ptr.vmem [resolvable:$true] %s490_s1 }
  0x55   : > { %s1179_s25 = scalar_lea.vmem [#allocation8], %s674_s9  ;;  %s462_s10 = scalar_lea.sflag [#allocation10], %s1154_s6 }
  0x56   : > { %vm397_vm0 = vcmp.lt.s32.totalorder %v387_v1, 2  ;;  %v392_v7 = vmul.f32 %v391_v5, %v391_v5  ;;  %s476_s11 = sshll.u32 %s1179_s25, 4  ;;  %s858_s12 = scalar_lea.vmem %s1177_s1, 128  ;;  %s477_s11 = int_to_ptr.vmem [resolvable:$true] %s476_s11 }
  0x57   : > { %v399_v6 = vsel %vm397_vm0, %v390_v4, 0.0  ;;  %p859_p8 = scmp.ne.s32.totalorder %s1177_s1, %s858_s12  ;;  %s979_s30 = smov [#allocation9]  }
  0x58   : > { %455 = vst [vmem:[%s365_s24] sm:$0xff] %v399_v6  ;;  %v393_v8 = vmul.f32 %v392_v7, %v390_v4  ;;  %s862_s5 = sshll.u32 %s979_s30, 4  ;;  %s863_s5 = int_to_ptr.vmem [resolvable:$false] %s862_s5 }
  0x59   : > { %p860_p0 = pnand %p859_p8, %p1061_p9  ;;  %s864_s8 = scalar_lea.vmem %s863_s5, 256 }
  0x5a   : > { %p865_p4 = scmp.lt.s32.totalorder %s1177_s1, %s863_s5  ;;  %p866_p10 = scmp.lt.s32.totalorder %s864_s8, %s858_s12 }
  0x5b   : > { %p861_p3 = pneg %p860_p0 }
  0x5c   : > { %p867_p13 = por %p866_p10, %p865_p4 }
  0x5e   : > { %p868_p12 = pnand %p867_p13, %p861_p3 }
  0x60   : > { %871 = shalt.err (!%p868_p12)
}
  0x61   : > { %s872_s26 = scalar_lea.hbm %s1175_s29, 128  ;;  %s876_s7 = scalar_lea.hbm %s1252_s4, 256 }
  0x62   : > { %p873_p1 = scmp.ne.s32.totalorder %s1175_s29, %s872_s26  ;;  %p877_p6 = scmp.lt.s32.totalorder %s1175_s29, %s1252_s4 }
  0x63   : > { %p878_p7 = scmp.lt.s32.totalorder %s876_s7, %s872_s26 }
  0x64   : > { %p874_p2 = pnand %p873_p1, %p1061_p9 }
  0x65   : > { %p879_p8 = por %p878_p7, %p877_p6 }
  0x66   : > { %p875_p5 = pneg %p874_p2 }
  0x68   : > { %p880_p0 = pnand %p879_p8, %p875_p5 }
  0x6a   : > { %883 = shalt.err (!%p880_p0)
}
  0x6b   : > { %701 = dma.vmem_to_hbm [thread:$0]  (%p1061_p9), %s1177_s1, 128, %s1175_s29, %s462_s10   ;;  %v398_v9 = vsel %vm397_vm0, %v393_v8, 0.0 }
  0x6c   : > { %s474_s27 = scalar_lea.hbm %s1251_s3, %s687_s13  ;;  %452 = vst [vmem:[%s1179_s25] sm:$0xff] %v398_v9  ;;  %s457_s23 = scalar_lea.sflag [#allocation4], %s1154_s6 }
  0x6d   : > { %s884_s12 = scalar_lea.vmem %s477_s11, 128  ;;  %s980_s30 = smov [#allocation8]  }
  0x6e   : > { %p885_p3 = scmp.ne.s32.totalorder %s477_s11, %s884_s12  ;;  %s888_s5 = sshll.u32 %s980_s30, 4  ;;  %s889_s5 = int_to_ptr.vmem [resolvable:$false] %s888_s5 }
  0x6f   : > { %s890_s1 = scalar_lea.vmem %s889_s5, 256  ;;  %p891_p13 = scmp.lt.s32.totalorder %s477_s11, %s889_s5 }
  0x70   : > { %p886_p4 = pnand %p885_p3, %p1061_p9  ;;  %p892_p12 = scmp.lt.s32.totalorder %s890_s1, %s884_s12 }
  0x72   : > { %p887_p10 = pneg %p886_p4  ;;  %p893_p1 = por %p892_p12, %p891_p13 }
  0x74   : > { %p894_p2 = pnand %p893_p1, %p887_p10 }
  0x76   : > { %897 = shalt.err (!%p894_p2)
}
  0x77   : > { %s898_s18 = scalar_lea.hbm %s474_s27, 128  ;;  %s902_s29 = scalar_lea.hbm %s1251_s3, 256 }
  0x78   : > { %p899_p5 = scmp.ne.s32.totalorder %s474_s27, %s898_s18  ;;  %p903_p8 = scmp.lt.s32.totalorder %s474_s27, %s1251_s3 }
  0x79   : > { %p904_p0 = scmp.lt.s32.totalorder %s902_s29, %s898_s18 }
  0x7a   : > { %p900_p6 = pnand %p899_p5, %p1061_p9 }
  0x7b   : > { %p905_p3 = por %p904_p0, %p903_p8 }
  0x7c   : > { %p901_p7 = pneg %p900_p6 }
  0x7e   : > { %p906_p4 = pnand %p905_p3, %p901_p7 }
  0x80   : > { %909 = shalt.err (!%p906_p4)
}
  0x81   : > { %700 = dma.vmem_to_hbm [thread:$0]  (%p1061_p9), %s477_s11, 128, %s474_s27, %s457_s23  }
  0x82 PF: > { %s502_s26 = sand.u32 1, %s952_s15   ;;  %p1274_p10 = scmp.ge.s32.totalorder %s972_s20, 2 }
  0x83   : > { %s503_s14 = scalar_lea.sflag [#allocation4], %s502_s26 }
  0x84   : > { %p715_p13 = pnand %p1274_p10, %p1068_p11 }
  0x86   : > { %p716_p12 = pneg %p715_p13 }
  0x88   : > { %943 = dma.done.wait (%p716_p12), %s503_s14, 128  }
  0x89   : > { %945 = vsyncadd (%p716_p12), %s503_s14, 4294967168  ;;  %s512_s19 = scalar_lea.sflag [#allocation10], %s502_s26 }
  0x8a   : > { %947 = dma.done.wait (%p716_p12), %s512_s19, 128  }
  0x8b   : > { %949 = vsyncadd (%p716_p12), %s512_s19, 4294967168  ;;  %s27_s20 = sadd.s32 1, %s972_s20   ;;  %s1275_s28 = sld [smem:[#allocation17_spill]] }
  0x8c   : > { %p24_p1 = scmp.ge.s32.totalorder %s27_s20, 4   ;;  %s1276_s18 = sld [smem:[#allocation15_spill]] }
  0x8d   : > { %s1277_s19 = sld [smem:[#allocation16_spill]]  ;;  %s1278_s15 = smov %s956_s16 }
  0x8e   : > { %s1279_s16 = smov %s960_s17  ;;  %26 = sbr.rel (!%p24_p1) target bundleno = 12 (0xc), region = 131 }
  0x91   : > { %s1280_s17 = smov %s1275_s28 }
  0x93   :  { %517 = vsyncpa [#allocation3], 1 }
  0x94   :  { %519 = vsyncpa [#allocation3 + $0x1], 1 }
  0x95   :  { %520 = vsyncpa [#allocation6], 1 }
  0x96   :  { %522 = vsyncpa [#allocation6 + $0x1], 1 }
  0x97   :  { %523 = vsyncpa [#allocation4], 1 }
  0x98   :  { %525 = vsyncpa [#allocation4 + $0x1], 1 }
  0x99   :  { %526 = vsyncpa [#allocation10], 1 }
  0x9a   :  { %528 = vsyncpa [#allocation10 + $0x1], 1 }

</bundles_post_ra>
